<compile_context>
chip_gen: v5e
topology: v5e:2x2
jax: 0.10.0
libtpu: 0.0.40
codegen_flags: <defaults>
</compile_context>

<pallas_src>
import functools
import math
import random as rd

import numpy as np
import jax
import jax.numpy as jnp
from jax import lax
from jax.experimental import pallas as pl
from jax.experimental.pallas import tpu as pltpu

EPS = math.log(1e-6)  # fill value used by MelPitchShift


def _specaug_kernel(scal_ref, x_ref, o_ref, *, nbins, shift):
    """One grid step: a block of `rows = bblk * nbins` flattened (batch, freq)
    rows by the full (lane-dense) time axis.

    scal_ref (SMEM, int32[3]): [fm_apply, f0, flen]   (frequency mask params)
    x_ref / o_ref (VMEM):      (rows, T) block of the flattened spectrogram.

    Per output row r (batch-local mel bin i = r mod nbins, src = i - shift):
        out = EPS             if src outside [0, nbins)      (pitch-shift fill)
            = 0               if fm_apply and f0 <= src < f0 + flen  (freq mask)
            = x[..., src, :]  otherwise
    """
    fm_apply = scal_ref[0]
    f0 = scal_ref[1]
    flen = scal_ref[2]

    rows, tcols = o_ref.shape
    dtype = o_ref.dtype
    eps = jnp.asarray(EPS, dtype)
    zero = jnp.asarray(0, dtype)

    # ---- per-row predicates on a tiny (rows, 1) tile: negligible VALU work.
    mel = lax.broadcasted_iota(jnp.int32, (rows, 1), 0) % nbins
    src = mel - shift                                    # source mel bin
    oob = (src < 0) | (src >= nbins)                     # rolled-in rows
    fm = (fm_apply != 0) & (src >= f0) & (src < f0 + flen)
    over_val = jnp.where(oob, eps, zero)                 # (rows, 1), in dtype
    override = (oob | fm).astype(jnp.int32)              # (rows, 1)

    # ---- shifted data: one sublane rotate of the whole block (XLU, ~free).
    # Rows whose source would cross a batch (or block) boundary wrap around,
    # but those are exactly the rows the `override` mask replaces with EPS.
    x = x_ref[...]
    s_roll = shift % rows                                # static, non-negative
    shifted = pltpu.roll(x, s_roll, axis=0) if s_roll else x

    # ---- one dense, unmasked full-block store: ~2 VPU ops / element.
    take = jnp.broadcast_to(override, (rows, tcols)) != 0
    o_ref[...] = jnp.where(take, jnp.broadcast_to(over_val, (rows, tcols)),
                           shifted)


def _pick_batch_block(B, F, T, itemsize,
                      target_bytes=2 * 1024 * 1024,
                      split_floor_bytes=1 * 1024 * 1024):
    """Batch elements per grid step.

    ~2 MiB blocks (>=85% of measured HBM roofline); only keep >= 2 grid steps
    (v7x megacore) when the halves stay >= 1 MiB - on single-core v5e/v6e a
    forced split is pure per-step overhead.  rows = bblk*F must be a multiple
    of 8 (BlockSpec sublane constraint); otherwise fall back to one block
    covering the whole array (always legal).
    """
    per_item = F * T * itemsize
    cap = max(1, target_bytes // per_item)
    if B > 1 and (B // 2) * per_item >= split_floor_bytes:
        cap = min(cap, B // 2)
    best = None
    for d in range(1, B + 1):
        if B % d == 0 and d <= cap and (d * F) % 8 == 0:
            best = d
    if best is None:
        # TODO(synk): rows not 8-aligned; single full-array block (grid==1).
        best = B
    return best


def mel_spec_augment(x, fm_apply, f0, flen, shift):
    """x: (B, F, T).  fm_apply/f0/flen: runtime int32 scalars (scalar prefetch).
    shift: Python int (trace-time constant; <= 17 values for bin_range [-8, 8])."""
    B, F, T = x.shape
    itemsize = jnp.dtype(x.dtype).itemsize

    # Lane-dense time axis: pad T up to a multiple of 128 so every store is an
    # unmasked dense vst; padded lanes are sliced off afterwards.
    Tp = T if T % 128 == 0 else ((T + 127) // 128) * 128
    xw = x if Tp == T else jnp.pad(x, ((0, 0), (0, 0), (0, Tp - T)))

    R = B * F
    xf = xw.reshape(R, Tp)                       # free, contiguous reshape

    bblk = _pick_batch_block(B, F, Tp, itemsize)
    rows = bblk * F
    grid = (R // rows,)

    scalars = jnp.asarray([fm_apply, f0, flen], dtype=jnp.int32)
    kernel = functools.partial(_specaug_kernel, nbins=F, shift=int(shift))

    out = pl.pallas_call(
        kernel,
        out_shape=jax.ShapeDtypeStruct((R, Tp), x.dtype),
        grid_spec=pltpu.PrefetchScalarGridSpec(
            num_scalar_prefetch=1,
            grid=grid,
            in_specs=[pl.BlockSpec((rows, Tp), lambda g, s: (g, 0))],
            out_specs=pl.BlockSpec((rows, Tp), lambda g, s: (g, 0)),
        ),
        compiler_params=pltpu.CompilerParams(
            dimension_semantics=("parallel",),
            vmem_limit_bytes=32 * 1024 * 1024),
        cost_estimate=pl.CostEstimate(
            flops=0, transcendentals=0,
            bytes_accessed=2 * R * Tp * itemsize),
    )(scalars, xf)

    out = out.reshape(B, F, Tp)
    return out if Tp == T else out[:, :, :T]


def reference(x, fm_apply, f0, flen, shift):
    """Pure-numpy replica of the PyTorch forward (given the RNG draws)."""
    y = np.array(x, dtype=np.float32, copy=True)
    if fm_apply:
        y[:, f0:f0 + flen, :] = 0.0
    y = np.roll(y, shift, axis=1)
    if shift > 0:
        y[:, :shift, :] = EPS
    elif shift < 0:
        y[:, shift:, :] = EPS
    return y


if __name__ == "__main__":
    # Deterministic inputs (nbins = 32 mel bins = dim -2, lane-dense T = 128).
    B, F, T = 4, 32, 128
    key = jax.random.PRNGKey(0)
    x = jax.random.normal(key, (B, F, T), dtype=jnp.float32)
    x_np = np.asarray(x)

    # Host-side random augmentation decisions (mirrors `rd.*` in the module).
    rd.seed(0)
    threshold = 0.5
    nbins = 32
    fm_apply = 1 if rd.random() > threshold else 0
    if fm_apply:
        flen = rd.randint(0, nbins)          # mask width
        f0 = rd.randint(0, F - flen)         # mask start
    else:
        flen, f0 = 0, 0
    shift = rd.randint(-8, 8)                # MelPitchShift bin_range=[-8, 8]

    cases = [
        (fm_apply, f0, flen, shift),   # the module's actual RNG draw
        (1, 5, 7, 3),                  # positive shift + mask band
        (0, 0, 0, -5),                 # negative shift, no mask
        (1, 0, nbins, 0),              # full-band mask, no shift
    ]
    for fa, a, l, sh in cases:
        out = jax.block_until_ready(mel_spec_augment(x, fa, a, l, sh))
        ref = reference(x_np, fa, a, l, sh)
        np.testing.assert_allclose(np.asarray(out), ref, rtol=1e-6, atol=1e-6)

    print("KERNEL_OK")
</pallas_src>

<mosaic_0001>
module attributes {stable_mosaic.version = 11 : i64} {
  func.func @_specaug_kernel(%arg0: i32, %arg1: memref<3xi32, #tpu.memory_space<smem>>, %arg2: memref<128x128xf32, #tpu.memory_space<vmem>>, %arg3: memref<128x128xf32, #tpu.memory_space<vmem>>) attributes {dimension_semantics = [#tpu.dimension_semantics<parallel>], iteration_bounds = array<i64: 1>, scalar_prefetch = 1 : i64, scratch_operands = 0 : i64, tpu.core_type = #tpu.core_type<tc>, window_params = [{transform_indices = @transform_0, window_bounds = array<i64: 128, 128>}, {transform_indices = @transform_1, window_bounds = array<i64: 128, 128>}]} {
    %c0 = arith.constant 0 : index
    %0 = memref.load %arg1[%c0] : memref<3xi32, #tpu.memory_space<smem>>
    %c1 = arith.constant 1 : index
    %1 = memref.load %arg1[%c1] : memref<3xi32, #tpu.memory_space<smem>>
    %c2 = arith.constant 2 : index
    %2 = memref.load %arg1[%c2] : memref<3xi32, #tpu.memory_space<smem>>
    %3 = tpu.iota {dimensions = array<i32: 0>} : vector<128x1xi32>
    %c32_i32 = arith.constant 32 : i32
    %c0_i32 = arith.constant 0 : i32
    %4 = arith.cmpi eq, %c32_i32, %c0_i32 : i32
    %c1_i32 = arith.constant 1 : i32
    %5 = arith.select %4, %c1_i32, %c32_i32 : i32
    %6 = vector.broadcast %5 : i32 to vector<128x1xi32>
    %7 = arith.remsi %3, %6 : vector<128x1xi32>
    %c0_i32_0 = arith.constant 0 : i32
    %8 = vector.broadcast %c0_i32_0 : i32 to vector<128x1xi32>
    %9 = arith.cmpi ne, %7, %8 : vector<128x1xi32>
    %c0_i32_1 = arith.constant 0 : i32
    %10 = vector.broadcast %c0_i32_1 : i32 to vector<128x1xi32>
    %11 = arith.cmpi slt, %7, %10 : vector<128x1xi32>
    %c0_i32_2 = arith.constant 0 : i32
    %12 = arith.cmpi slt, %5, %c0_i32_2 : i32
    %13 = vector.broadcast %12 : i1 to vector<128x1xi1>
    %14 = vector.broadcast %13 : vector<128x1xi1> to vector<128x1xi1>
    %15 = arith.xori %11, %14 : vector<128x1xi1>
    %16 = arith.andi %15, %9 : vector<128x1xi1>
    %17 = vector.broadcast %5 : i32 to vector<128x1xi32>
    %18 = arith.addi %7, %17 : vector<128x1xi32>
    %19 = arith.select %16, %18, %7 : vector<128x1xi1>, vector<128x1xi32>
    %c0_i32_3 = arith.constant 0 : i32
    %20 = vector.broadcast %c0_i32_3 : i32 to vector<128x1xi32>
    %21 = arith.subi %19, %20 : vector<128x1xi32>
    %c0_i32_4 = arith.constant 0 : i32
    %22 = vector.broadcast %c0_i32_4 : i32 to vector<128x1xi32>
    %23 = arith.cmpi slt, %21, %22 : vector<128x1xi32>
    %c32_i32_5 = arith.constant 32 : i32
    %24 = vector.broadcast %c32_i32_5 : i32 to vector<128x1xi32>
    %25 = arith.cmpi sge, %21, %24 : vector<128x1xi32>
    %26 = arith.ori %23, %25 : vector<128x1xi1>
    %c0_i32_6 = arith.constant 0 : i32
    %27 = arith.cmpi ne, %0, %c0_i32_6 : i32
    %28 = vector.broadcast %1 : i32 to vector<128x1xi32>
    %29 = arith.cmpi sge, %21, %28 : vector<128x1xi32>
    %30 = vector.broadcast %27 : i1 to vector<128x1xi1>
    %31 = arith.andi %30, %29 : vector<128x1xi1>
    %32 = arith.addi %1, %2 : i32
    %33 = vector.broadcast %32 : i32 to vector<128x1xi32>
    %34 = arith.cmpi slt, %21, %33 : vector<128x1xi32>
    %35 = arith.andi %31, %34 : vector<128x1xi1>
    %cst = arith.constant -13.8155107 : f32
    %cst_7 = arith.constant 0.000000e+00 : f32
    %36 = vector.broadcast %cst : f32 to vector<128x1xf32>
    %37 = vector.broadcast %cst_7 : f32 to vector<128x1xf32>
    %38 = arith.select %26, %36, %37 : vector<128x1xi1>, vector<128x1xf32>
    %39 = arith.ori %26, %35 : vector<128x1xi1>
    %40 = arith.extui %39 : vector<128x1xi1> to vector<128x1xi32>
    %c0_8 = arith.constant 0 : index
    %c0_9 = arith.constant 0 : index
    %41 = vector.load %arg2[%c0_8, %c0_9] : memref<128x128xf32, #tpu.memory_space<vmem>>, vector<128x128xf32>
    %42 = vector.shape_cast %40 : vector<128x1xi32> to vector<128x1xi32>
    %43 = vector.broadcast %42 : vector<128x1xi32> to vector<128x128xi32>
    %c0_i32_10 = arith.constant 0 : i32
    %44 = vector.broadcast %c0_i32_10 : i32 to vector<128x128xi32>
    %45 = arith.cmpi ne, %43, %44 : vector<128x128xi32>
    %46 = vector.shape_cast %38 : vector<128x1xf32> to vector<128x1xf32>
    %47 = vector.broadcast %46 : vector<128x1xf32> to vector<128x128xf32>
    %48 = arith.select %45, %47, %41 : vector<128x128xi1>, vector<128x128xf32>
    %c0_11 = arith.constant 0 : index
    %c0_12 = arith.constant 0 : index
    %49 = vector.load %arg3[%c0_11, %c0_12] : memref<128x128xf32, #tpu.memory_space<vmem>>, vector<128x128xf32>
    tpu.vector_store %arg3[%c0_11, %c0_12], %48 {strides = array<i32>} : memref<128x128xf32, #tpu.memory_space<vmem>>, vector<128x128xf32>,
    return
  }
  func.func @transform_0(%arg0: i32, %arg1: memref<3xi32, #tpu.memory_space<smem>>) -> (i32, i32) {
    %c0_i32 = arith.constant 0 : i32
    %c0_i32_0 = arith.constant 0 : i32
    return %arg0, %c0_i32 : i32, i32
  }
  func.func @transform_1(%arg0: i32, %arg1: memref<3xi32, #tpu.memory_space<smem>>) -> (i32, i32) {
    %c0_i32 = arith.constant 0 : i32
    %c0_i32_0 = arith.constant 0 : i32
    return %arg0, %c0_i32 : i32, i32
  }
}

</mosaic_0001>

<bundles_post_ra>
// kernel: tpu_custom_call.1
= control target key start
LH: loop header
LB: loop body
LE: loop exit
PB: predicated region body
PF: predicated region fallthrough
CT: control target
= control target key end

     0   :  { %s537_s12 = smov [#allocation3]   ;;  %s740_s0 = inlined_call_operand.hbm [shape: s32[3], index: 0, kind: input, shape index: {}]   ;;  %s741_s1 = inlined_call_operand.hbm [shape: f32[128,128], index: 1, kind: input, shape index: {}]   ;;  %s742_s2 = inlined_call_operand.hbm [shape: f32[128,128], index: 2, kind: output, shape index: {}]  }
   0x1   :  { %s8_s11 = sshll.u32 %s740_s0, 4  ;;  %s9_s11 = int_to_ptr.hbm [resolvable:$true] %s8_s11 }
   0x2   :  { %11 = dma.hbm_to_smem %s9_s11, 16, %s537_s12, [#allocation2] }
   0x3   :  { %531 = dma.done.wait [#allocation2], 16 }
   0x4   :  { %532 = vsyncadd [#allocation2], 4294967280 }
   0x5   :  { %14 = sfence }
   0x6   :  { %15 = vsyncpa [#allocation5], 0 }
   0x7   :  { %16 = vsyncpa [#allocation6], 0  ;;  %s21_s15 = sshll.u32 %s741_s1, 4  ;;  %s538_s16 = smov [#allocation4]   ;;  %s22_s15 = int_to_ptr.hbm [resolvable:$true] %s21_s15 }
   0x8   :  { %s23_s17 = sshll.u32 %s538_s16, 4  ;;  %s539_s18 = smov 128   ;;  %s24_s17 = int_to_ptr.vmem [resolvable:$true] %s23_s17 }
   0x9   :  { %s540_s19 = smov 8  }
   0xa   :  { %29 = dma.hbm_to_vmem [thread:$0]  %s22_s15, 2048, %s24_s17, [#allocation5], %s539_s18, %s539_s18, %s540_s19  }
   0xb   :  { %533 = dma.done.wait [#allocation5], 2048  }
   0xc   :  { %534 = vsyncadd [#allocation5], 4294965248  ;;  %v37_v0 = vlaneseq  ;;  %s34_s0 = sld [smem:[#allocation3]]  ;;  %v397_v15 = vld [vmem:[#allocation4] sm:$0xff]  ;;  %v398_v17 = vld [vmem:[#allocation4 + $0x8] sm:$0xff]  ;;  %s541_s23 = smov [#allocation7]  }
   0xd   :  { %s464_s20 = sld [smem:[#allocation3 + $0x1]]  ;;  %v399_v22 = vld [vmem:[#allocation4 + $0x10] sm:$0xff]  ;;  %v400_v27 = vld [vmem:[#allocation4 + $0x18] sm:$0xff]  ;;  %v401_v32 = vld [vmem:[#allocation4 + $0x20] sm:$0xff]  ;;  %s449_s24 = sshll.u32 %s541_s23, 4  ;;  %s450_s24 = int_to_ptr.vmem [resolvable:$true] %s449_s24 }
   0xe   :  { %v566_v1 = vshrl.u32 %v37_v0, 7  ;;  %s465_s21 = sld [smem:[#allocation3 + $0x2]]  ;;  %v402_v37 = vld [vmem:[#allocation4 + $0x28] sm:$0xff]  ;;  %v403_v42 = vld [vmem:[#allocation4 + $0x30] sm:$0xff]  ;;  %v404_v47 = vld [vmem:[#allocation4 + $0x38] sm:$0xff]  ;;  %s451_s27 = sshll.u32 %s742_s2, 4  ;;  %s452_s27 = int_to_ptr.hbm [resolvable:$true] %s451_s27 }
   0xf   :  { %v405_v52 = vld [vmem:[#allocation4 + $0x40] sm:$0xff]  ;;  %v406_v57 = vld [vmem:[#allocation4 + $0x48] sm:$0xff]  ;;  %v407_v62 = vld [vmem:[#allocation4 + $0x50] sm:$0xff] }
  0x10   :  { %v39_v2 = vadd.s32 8, %v566_v1  ;;  %v58_v3 = vand.u32 31, %v566_v1  ;;  %v40_v4 = vadd.s32 16, %v566_v1  ;;  %v41_v7 = vadd.s32 24, %v566_v1  ;;  %v412_v18 = vld [vmem:[#allocation4 + $0x78] sm:$0xff] }
  0x11   :  { %v42_v10 = vadd.s32 32, %v566_v1  ;;  %v43_v13 = vadd.s32 40, %v566_v1  ;;  %v44_v20 = vadd.s32 48, %v566_v1  ;;  %v45_v25 = vadd.s32 56, %v566_v1 }
  0x12   :  { %p294_p0 = scmp.ne.s32.totalorder %s34_s0, 0  ;;  %v65_v6 = vand.u32 31, %v39_v2  ;;  %v72_v9 = vand.u32 31, %v40_v4  ;;  %v79_v16 = vand.u32 31, %v41_v7  ;;  %v46_v30 = vadd.s32 64, %v566_v1  ;;  %v408_v4 = vld [vmem:[#allocation4 + $0x58] sm:$0xff] }
  0x13   :  { %v571_v5 = vstv %s464_s20  ;;  %v86_v19 = vand.u32 31, %v42_v10  ;;  %v93_v24 = vand.u32 31, %v43_v13  ;;  %v100_v29 = vand.u32 31, %v44_v20 }
  0x14   :  { %s312_s1 = scalar_select %p294_p0, 1, 0  ;;  %vm575_vm0 = vcmp.ge.s32.totalorder %v58_v3, %v571_v5  ;;  %vm297_vm3 = vcmp.ge.s32.totalorder %v65_v6, %v571_v5  ;;  %vm595_vm7 = vcmp.ge.s32.totalorder %v72_v9, %v571_v5  ;;  %vm604_vm11 = vcmp.ge.s32.totalorder %v79_v16, %v571_v5 }
  0x15   :  { %s331_s22 = sadd.s32 %s465_s21, %s464_s20  ;;  %vm615_vm15 = vcmp.ge.s32.totalorder %v86_v19, %v571_v5  ;;  %v107_v34 = vand.u32 31, %v45_v25  ;;  %v47_v35 = vadd.s32 72, %v566_v1  ;;  %v114_v39 = vand.u32 31, %v46_v30 }
  0x16   :  { %v313_v11 = vstv %s312_s1  ;;  %v580_v12 = vstv %s331_s22  ;;  %v48_v40 = vadd.s32 80, %v566_v1  ;;  %v49_v45 = vadd.s32 88, %v566_v1 }
  0x17   :  { %vm583_vm1 = vcmp.eq.s32.totalorder %v313_v11, 1  ;;  %vm333_vm2 = vcmp.lt.s32.totalorder %v58_v3, %v580_v12  ;;  %vm334_vm5 = vcmp.lt.s32.totalorder %v65_v6, %v580_v12  ;;  %vm335_vm9 = vcmp.lt.s32.totalorder %v72_v9, %v580_v12  ;;  %v410_v11 = vld [vmem:[#allocation4 + $0x68] sm:$0xff] }
  0x18   :  { %vm315_vm4 = vmand %vm583_vm1, %vm575_vm0  ;;  %vm336_vm13 = vcmp.lt.s32.totalorder %v79_v16, %v580_v12  ;;  %v121_v44 = vand.u32 31, %v47_v35  ;;  %v128_v49 = vand.u32 31, %v48_v40  ;;  %v50_v50 = vadd.s32 96, %v566_v1  ;;  %v411_v16 = vld [vmem:[#allocation4 + $0x70] sm:$0xff] }
  0x19   :  { %vm349_vm6 = vmand %vm315_vm4, %vm333_vm2  ;;  %vm337_vm2 = vcmp.lt.s32.totalorder %v86_v19, %v580_v12  ;;  %vm626_vm4 = vcmp.ge.s32.totalorder %v93_v24, %v571_v5  ;;  %v135_v54 = vand.u32 31, %v49_v45  ;;  %v51_v55 = vadd.s32 104, %v566_v1 }
  0x1a   :  { %v413_v21 = vsel %vm349_vm6, 0.0, %v397_v15  ;;  %vm316_vm8 = vmand %vm583_vm1, %vm297_vm3  ;;  %vm338_vm6 = vcmp.lt.s32.totalorder %v93_v24, %v580_v12  ;;  %v142_v59 = vand.u32 31, %v50_v50  ;;  %v52_v60 = vadd.s32 112, %v566_v1 }
  0x1b   :  { %429 = vst [vmem:[#allocation7] sm:$0xff] %v413_v21  ;;  %vm350_vm10 = vmand %vm316_vm8, %vm334_vm5  ;;  %vm637_vm8 = vcmp.ge.s32.totalorder %v100_v29, %v571_v5  ;;  %v149_v0 = vand.u32 31, %v51_v55  ;;  %v53_v2 = vadd.s32 120, %v566_v1  ;;  %v409_v1 = vld [vmem:[#allocation4 + $0x60] sm:$0xff] }
  0x1c   :  { %v414_v26 = vsel %vm350_vm10, 0.0, %v398_v17  ;;  %vm317_vm12 = vmand %vm583_vm1, %vm595_vm7  ;;  %vm339_vm10 = vcmp.lt.s32.totalorder %v100_v29, %v580_v12  ;;  %v156_v7 = vand.u32 31, %v52_v60 }
  0x1d   :  { %430 = vst [vmem:[#allocation7 + $0x8] sm:$0xff] %v414_v26  ;;  %vm351_vm14 = vmand %vm317_vm12, %vm335_vm9  ;;  %vm648_vm12 = vcmp.ge.s32.totalorder %v107_v34, %v571_v5  ;;  %v163_v9 = vand.u32 31, %v53_v2 }
  0x1e   :  { %v415_v31 = vsel %vm351_vm14, 0.0, %v399_v22  ;;  %vm318_vm0 = vmand %vm583_vm1, %vm604_vm11  ;;  %vm340_vm14 = vcmp.lt.s32.totalorder %v107_v34, %v580_v12 }
  0x1f   :  { %431 = vst [vmem:[#allocation7 + $0x10] sm:$0xff] %v415_v31  ;;  %vm352_vm3 = vmand %vm318_vm0, %vm336_vm13  ;;  %vm659_vm0 = vcmp.ge.s32.totalorder %v114_v39, %v571_v5 }
  0x20   :  { %v416_v36 = vsel %vm352_vm3, 0.0, %v400_v27  ;;  %vm319_vm5 = vmand %vm583_vm1, %vm615_vm15  ;;  %vm341_vm3 = vcmp.lt.s32.totalorder %v114_v39, %v580_v12 }
  0x21   :  { %432 = vst [vmem:[#allocation7 + $0x18] sm:$0xff] %v416_v36  ;;  %vm353_vm7 = vmand %vm319_vm5, %vm337_vm2  ;;  %vm670_vm5 = vcmp.ge.s32.totalorder %v121_v44, %v571_v5 }
  0x22   :  { %v417_v41 = vsel %vm353_vm7, 0.0, %v401_v32  ;;  %vm320_vm9 = vmand %vm583_vm1, %vm626_vm4  ;;  %vm342_vm7 = vcmp.lt.s32.totalorder %v121_v44, %v580_v12 }
  0x23   :  { %433 = vst [vmem:[#allocation7 + $0x20] sm:$0xff] %v417_v41  ;;  %vm354_vm11 = vmand %vm320_vm9, %vm338_vm6  ;;  %vm681_vm9 = vcmp.ge.s32.totalorder %v128_v49, %v571_v5 }
  0x24   :  { %v418_v46 = vsel %vm354_vm11, 0.0, %v402_v37  ;;  %vm321_vm13 = vmand %vm583_vm1, %vm637_vm8  ;;  %vm343_vm11 = vcmp.lt.s32.totalorder %v128_v49, %v580_v12 }
  0x25   :  { %434 = vst [vmem:[#allocation7 + $0x28] sm:$0xff] %v418_v46  ;;  %vm355_vm15 = vmand %vm321_vm13, %vm339_vm10  ;;  %vm692_vm13 = vcmp.ge.s32.totalorder %v135_v54, %v571_v5 }
  0x26   :  { %v419_v51 = vsel %vm355_vm15, 0.0, %v403_v42  ;;  %vm322_vm2 = vmand %vm583_vm1, %vm648_vm12  ;;  %vm344_vm15 = vcmp.lt.s32.totalorder %v135_v54, %v580_v12 }
  0x27   :  { %435 = vst [vmem:[#allocation7 + $0x30] sm:$0xff] %v419_v51  ;;  %vm356_vm4 = vmand %vm322_vm2, %vm340_vm14  ;;  %vm703_vm2 = vcmp.ge.s32.totalorder %v142_v59, %v571_v5 }
  0x28   :  { %v420_v56 = vsel %vm356_vm4, 0.0, %v404_v47  ;;  %vm323_vm6 = vmand %vm583_vm1, %vm659_vm0  ;;  %vm345_vm4 = vcmp.lt.s32.totalorder %v142_v59, %v580_v12 }
  0x29   :  { %436 = vst [vmem:[#allocation7 + $0x38] sm:$0xff] %v420_v56  ;;  %vm357_vm8 = vmand %vm323_vm6, %vm341_vm3  ;;  %vm309_vm6 = vcmp.ge.s32.totalorder %v149_v0, %v571_v5 }
  0x2a   :  { %v421_v61 = vsel %vm357_vm8, 0.0, %v405_v52  ;;  %vm324_vm10 = vmand %vm583_vm1, %vm670_vm5  ;;  %vm346_vm8 = vcmp.lt.s32.totalorder %v149_v0, %v580_v12 }
  0x2b   :  { %437 = vst [vmem:[#allocation7 + $0x40] sm:$0xff] %v421_v61  ;;  %vm358_vm12 = vmand %vm324_vm10, %vm342_vm7  ;;  %vm719_vm10 = vcmp.ge.s32.totalorder %v156_v7, %v571_v5 }
  0x2c   :  { %v422_v3 = vsel %vm358_vm12, 0.0, %v406_v57  ;;  %vm325_vm14 = vmand %vm583_vm1, %vm681_vm9  ;;  %vm347_vm12 = vcmp.lt.s32.totalorder %v156_v7, %v580_v12 }
  0x2d   :  { %438 = vst [vmem:[#allocation7 + $0x48] sm:$0xff] %v422_v3  ;;  %vm359_vm0 = vmand %vm325_vm14, %vm343_vm11  ;;  %vm311_vm14 = vcmp.ge.s32.totalorder %v163_v9, %v571_v5 }
  0x2e   :  { %v423_v8 = vsel %vm359_vm0, 0.0, %v407_v62  ;;  %vm326_vm3 = vmand %vm583_vm1, %vm692_vm13  ;;  %vm348_vm0 = vcmp.lt.s32.totalorder %v163_v9, %v580_v12 }
  0x2f   :  { %439 = vst [vmem:[#allocation7 + $0x50] sm:$0xff] %v423_v8  ;;  %vm360_vm5 = vmand %vm326_vm3, %vm344_vm15 }
  0x30   :  { %v424_v10 = vsel %vm360_vm5, 0.0, %v408_v4  ;;  %vm327_vm7 = vmand %vm583_vm1, %vm703_vm2 }
  0x31   :  { %440 = vst [vmem:[#allocation7 + $0x58] sm:$0xff] %v424_v10  ;;  %vm361_vm9 = vmand %vm327_vm7, %vm345_vm4 }
  0x32   :  { %v425_v15 = vsel %vm361_vm9, 0.0, %v409_v1  ;;  %vm328_vm11 = vmand %vm583_vm1, %vm309_vm6 }
  0x33   :  { %441 = vst [vmem:[#allocation7 + $0x60] sm:$0xff] %v425_v15  ;;  %vm362_vm13 = vmand %vm328_vm11, %vm346_vm8 }
  0x34   :  { %v426_v17 = vsel %vm362_vm13, 0.0, %v410_v11  ;;  %vm329_vm15 = vmand %vm583_vm1, %vm719_vm10 }
  0x35   :  { %442 = vst [vmem:[#allocation7 + $0x68] sm:$0xff] %v426_v17  ;;  %vm363_vm2 = vmand %vm329_vm15, %vm347_vm12 }
  0x36   :  { %v427_v19 = vsel %vm363_vm2, 0.0, %v411_v16  ;;  %vm330_vm3 = vmand %vm583_vm1, %vm311_vm14 }
  0x37   :  { %443 = vst [vmem:[#allocation7 + $0x70] sm:$0xff] %v427_v19  ;;  %vm364_vm4 = vmand %vm330_vm3, %vm348_vm0 }
  0x38   :  { %v428_v5 = vsel %vm364_vm4, 0.0, %v412_v18 }
  0x39   :  { %444 = vst [vmem:[#allocation7 + $0x78] sm:$0xff] %v428_v5 }
  0x3a   :  { %457 = dma.vmem_to_hbm [thread:$0]  %s450_s24, 2048, %s452_s27, [#allocation6], %s539_s18, %s539_s18, %s540_s19  }
  0x3b   :  { %535 = dma.done.wait [#allocation6], 2048  }
  0x3c   :  { %536 = vsyncadd [#allocation6], 4294965248 }
  0x3d   :  { %462 = vsyncpa [#allocation5], 1 }
  0x3e   :  { %463 = vsyncpa [#allocation6], 1 }

</bundles_post_ra>
